<compile_context>
chip_gen: v5e
topology: v5e:2x2
jax: 0.10.0
libtpu: 0.0.40
codegen_flags: <defaults>
</compile_context>

<pallas_src>
import functools

import jax
import jax.numpy as jnp
from jax.experimental import pallas as pl
from jax.experimental.pallas import tpu as pltpu

NC = 3          # `nc` global of the original script (CIFAR-10 channels)
BN_EPS = 1e-5
Z_DIM = 20
Z_PAD = 128     # latent dim padded to a full lane group
BLOCK_M = 256   # M-tile for the fused matmul grid
VMEM_LIMIT = 32 << 20


def _round_up(x, m):
    return (x + m - 1) // m * m


# ----------------------------------------------------------------------------
# Pallas kernels
# ----------------------------------------------------------------------------
def _fused_matmul_kernel(x_ref, w_ref, scale_ref, bias_ref, o_ref, *, act):
    # out = act((x @ w) * scale + bias); scale/bias are per-output-channel.
    acc = jnp.dot(x_ref[...], w_ref[...], preferred_element_type=jnp.float32)
    acc = acc * scale_ref[...] + bias_ref[...]
    if act == "leaky_relu":          # LeakyReLU(0.2) used by encoder/decoder
        acc = jnp.where(acc > 0, acc, 0.2 * acc)
    elif act == "relu":
        acc = jnp.maximum(acc, 0.0)
    elif act == "sigmoid":
        acc = 1.0 / (1.0 + jnp.exp(-acc))
    o_ref[...] = acc.astype(o_ref.dtype)


def fused_matmul(x, w, scale, bias, act="none"):
    """Pallas matmul, bf16 operands / f32 accumulation, fused affine+activation.

    M is padded and tiled over a "parallel" grid axis; N is padded to a
    multiple of 128 so every store is lane-dense.  The wrapper slices the
    result back to (M, N).
    """
    M, K = x.shape
    K2, N = w.shape
    assert K == K2

    Np = _round_up(N, 128)
    if Np != N:
        w = jnp.pad(w, ((0, 0), (0, Np - N)))
        scale = jnp.pad(scale, (0, Np - N))
        bias = jnp.pad(bias, (0, Np - N))

    Mp = _round_up(M, 8)
    if Mp <= BLOCK_M:
        bm = Mp
    else:
        bm = BLOCK_M
        Mp = _round_up(M, bm)
    if Mp != M:
        x = jnp.pad(x, ((0, Mp - M), (0, 0)))

    kernel = functools.partial(_fused_matmul_kernel, act=act)
    out = pl.pallas_call(
        kernel,
        out_shape=jax.ShapeDtypeStruct((Mp, Np), jnp.float32),
        grid=(Mp // bm,),
        in_specs=[
            pl.BlockSpec((bm, K), lambda i: (i, 0)),
            pl.BlockSpec((K, Np), lambda i: (0, 0)),
            pl.BlockSpec((1, Np), lambda i: (0, 0)),
            pl.BlockSpec((1, Np), lambda i: (0, 0)),
        ],
        out_specs=pl.BlockSpec((bm, Np), lambda i: (i, 0)),
        compiler_params=pltpu.CompilerParams(
            dimension_semantics=("parallel",),
            vmem_limit_bytes=VMEM_LIMIT),
    )(
        x.astype(jnp.bfloat16),
        w.astype(jnp.bfloat16),
        scale.reshape(1, Np).astype(jnp.float32),
        bias.reshape(1, Np).astype(jnp.float32),
    )
    return out[:M, :N]


def _bottleneck_kernel(x_ref, w1_ref, b1_ref, wmu_ref, bmu_ref, wlv_ref,
                       blv_ref, eps_ref, w3_ref, b3_ref, w4_ref, b4_ref,
                       mu_ref, lv_ref, dec_ref):
    """Fused fc1 -> (fc21, fc22) -> reparameterize -> relu(fc3) -> fc4."""
    f32 = jnp.float32
    bf16 = jnp.bfloat16
    h1 = jnp.dot(x_ref[...], w1_ref[...], preferred_element_type=f32) + b1_ref[...]
    h1b = h1.astype(bf16)
    mu = jnp.dot(h1b, wmu_ref[...], preferred_element_type=f32) + bmu_ref[...]
    lv = jnp.dot(h1b, wlv_ref[...], preferred_element_type=f32) + blv_ref[...]
    z = mu + eps_ref[...] * jnp.exp(0.5 * lv)            # reparameterize
    h3 = jnp.dot(z.astype(bf16), w3_ref[...], preferred_element_type=f32) + b3_ref[...]
    h3 = jnp.maximum(h3, 0.0)                            # ReLU
    dec = jnp.dot(h3.astype(bf16), w4_ref[...], preferred_element_type=f32) + b4_ref[...]
    mu_ref[...] = mu
    lv_ref[...] = lv
    dec_ref[...] = dec


def bottleneck(params, conv_flat, eps):
    """Runs the whole FC bottleneck in a single Pallas kernel.

    The latent dim (20) is zero-padded to 128 lanes; padded columns stay
    exactly zero through the reparameterization, so fc3 (with zero-padded
    weight rows) is unaffected.  mu/logvar are sliced back to 20 columns.
    """
    B = conv_flat.shape[0]
    w1, b1 = params["fc1"]
    wmu, bmu = params["fc21"]
    wlv, blv = params["fc22"]
    w3, b3 = params["fc3"]
    w4, b4 = params["fc4"]

    pad_n = Z_PAD - Z_DIM
    wmu_p = jnp.pad(wmu, ((0, 0), (0, pad_n)))
    bmu_p = jnp.pad(bmu, (0, pad_n))
    wlv_p = jnp.pad(wlv, ((0, 0), (0, pad_n)))
    blv_p = jnp.pad(blv, (0, pad_n))
    w3_p = jnp.pad(w3, ((0, pad_n), (0, 0)))
    eps_p = jnp.pad(eps, ((0, 0), (0, pad_n)))

    bf = jnp.bfloat16
    mu_p, lv_p, dec = pl.pallas_call(
        _bottleneck_kernel,
        out_shape=(jax.ShapeDtypeStruct((B, Z_PAD), jnp.float32),
                   jax.ShapeDtypeStruct((B, Z_PAD), jnp.float32),
                   jax.ShapeDtypeStruct((B, 1024), jnp.float32)),
        grid=(1,),
        in_specs=[
            pl.BlockSpec((B, 1024), lambda i: (0, 0)),
            pl.BlockSpec((1024, 512), lambda i: (0, 0)),
            pl.BlockSpec((1, 512), lambda i: (0, 0)),
            pl.BlockSpec((512, Z_PAD), lambda i: (0, 0)),
            pl.BlockSpec((1, Z_PAD), lambda i: (0, 0)),
            pl.BlockSpec((512, Z_PAD), lambda i: (0, 0)),
            pl.BlockSpec((1, Z_PAD), lambda i: (0, 0)),
            pl.BlockSpec((B, Z_PAD), lambda i: (0, 0)),
            pl.BlockSpec((Z_PAD, 512), lambda i: (0, 0)),
            pl.BlockSpec((1, 512), lambda i: (0, 0)),
            pl.BlockSpec((512, 1024), lambda i: (0, 0)),
            pl.BlockSpec((1, 1024), lambda i: (0, 0)),
        ],
        out_specs=(pl.BlockSpec((B, Z_PAD), lambda i: (0, 0)),
                   pl.BlockSpec((B, Z_PAD), lambda i: (0, 0)),
                   pl.BlockSpec((B, 1024), lambda i: (0, 0))),
        compiler_params=pltpu.CompilerParams(vmem_limit_bytes=VMEM_LIMIT),
    )(
        conv_flat.astype(bf), w1.astype(bf), b1.reshape(1, -1).astype(jnp.float32),
        wmu_p.astype(bf), bmu_p.reshape(1, -1).astype(jnp.float32),
        wlv_p.astype(bf), blv_p.reshape(1, -1).astype(jnp.float32),
        eps_p.astype(jnp.float32),
        w3_p.astype(bf), b3.reshape(1, -1).astype(jnp.float32),
        w4.astype(bf), b4.reshape(1, -1).astype(jnp.float32),
    )
    return mu_p[:, :Z_DIM], lv_p[:, :Z_DIM], dec


# ----------------------------------------------------------------------------
# Conv / ConvTranspose lowering (NHWC im2col glue + Pallas matmul)
# ----------------------------------------------------------------------------
def im2col_nhwc(x, k, s):
    """x: NHWC -> patches [B*Ho*Wo, k*k*C], columns ordered (kh, kw, C)."""
    B, H, W, C = x.shape
    Ho = (H - k) // s + 1
    Wo = (W - k) // s + 1
    cols = []
    for i in range(k):
        for j in range(k):
            cols.append(x[:, i:i + s * Ho:s, j:j + s * Wo:s, :])   # [B,Ho,Wo,C]
    p = jnp.concatenate(cols, axis=-1)                             # [B,Ho,Wo,k*k*C]
    return p.reshape(B * Ho * Wo, k * k * C), Ho, Wo


def fold_bn(bn, conv_b, cout):
    """Eval-mode BatchNorm folded into a per-channel (scale, bias) pair."""
    if bn is None:
        return jnp.ones((cout,), jnp.float32), conv_b.astype(jnp.float32)
    gamma, beta, rmean, rvar = bn
    scale = gamma / jnp.sqrt(rvar + BN_EPS)
    bias = beta + (conv_b - rmean) * scale
    return scale, bias


def conv2d_bn_act(x, w, conv_b, bn, k, s, act):
    """Conv2d (VALID, stride s) + eval-mode BatchNorm + activation. NHWC."""
    B, H, W, Cin = x.shape
    Cout = w.shape[0]
    patches, Ho, Wo = im2col_nhwc(x, k, s)
    # torch weight [Cout, Cin, kh, kw] -> rows ordered (kh, kw, Cin)
    wmat = w.transpose(2, 3, 1, 0).reshape(k * k * Cin, Cout)
    scale, bias = fold_bn(bn, conv_b, Cout)
    out = fused_matmul(patches, wmat, scale, bias, act=act)       # [B*Ho*Wo, Cout]
    return out.reshape(B, Ho, Wo, Cout)


def _transpose_conv_weight_matrix(w_t, k, s):
    """torch ConvTranspose2d weight [Cin, Cout, k, k] -> polyphase matmul weight
    [ntap*ntap*Cin, s*s*Cout]; rows ordered (jy, jx, cin), cols (py, px, cout)."""
    Cin, Cout = w_t.shape[0], w_t.shape[1]
    nt = -(-k // s)                          # taps per phase per spatial dim
    kp = nt * s
    w_pad = jnp.pad(w_t, ((0, 0), (0, 0), (0, kp - k), (0, kp - k)))
    # ky = py + s*m  ->  split into (m, py)
    w_r = w_pad.reshape(Cin, Cout, nt, s, nt, s)
    w_f = w_r[:, :, ::-1, :, ::-1, :]        # m -> j = nt-1-m (flip taps)
    w_e = w_f.transpose(2, 4, 0, 3, 5, 1)    # (jy, jx, Cin, py, px, Cout)
    return w_e.reshape(nt * nt * Cin, s * s * Cout)


def conv_transpose2d_bn_act(x, w_t, conv_b, bn, k, s, act):
    """ConvTranspose2d(stride s, padding 0) via polyphase decomposition:
    one stride-1 im2col with an ntap x ntap window over the (ntap-1)-padded
    input, one matmul producing all s*s output phases, then interleave."""
    B, H, W, Cin = x.shape
    Cout = w_t.shape[1]
    nt = -(-k // s)
    p = nt - 1
    Hout = (H - 1) * s + k
    Hp = H - 1 + nt                          # per-phase output extent
    xp = jnp.pad(x, ((0, 0), (p, p), (p, p), (0, 0))) if p > 0 else x
    patches, ho, wo = im2col_nhwc(xp, nt, 1)
    assert ho == Hp and wo == Hp

    wmat = _transpose_conv_weight_matrix(w_t, k, s)       # [nt*nt*Cin, s*s*Cout]
    scale, bias = fold_bn(bn, conv_b, Cout)
    scale_t = jnp.tile(scale, s * s)                      # cols are (phase, cout)
    bias_t = jnp.tile(bias, s * s)

    out = fused_matmul(patches, wmat, scale_t, bias_t, act=act)  # [B*Hp*Hp, s*s*Cout]
    out = out.reshape(B, Hp, Hp, s, s, Cout)
    out = out.transpose(0, 1, 3, 2, 4, 5).reshape(B, Hp * s, Hp * s, Cout)
    return out[:, :Hout, :Hout, :]


# ----------------------------------------------------------------------------
# Deterministic parameter construction (shapes from VAE_CNN.__init__)
# ----------------------------------------------------------------------------
def make_params(key):
    keys = iter(jax.random.split(key, 64))

    def uinit(shape, fan_in):
        bound = 1.0 / float(fan_in) ** 0.5
        return jax.random.uniform(next(keys), shape, jnp.float32, -bound, bound)

    def bn_init(c):
        return (jnp.ones((c,), jnp.float32), jnp.zeros((c,), jnp.float32),
                jnp.zeros((c,), jnp.float32), jnp.ones((c,), jnp.float32))

    params = {}

    enc_cfg = [(NC, 64, 4, 2), (64, 128, 3, 2), (128, 256, 3, 2),
               (256, 512, 3, 2), (512, 1024, 1, 2)]
    params["enc"] = []
    for cin, cout, k, s in enc_cfg:
        fan_in = cin * k * k
        params["enc"].append(
            (uinit((cout, cin, k, k), fan_in), uinit((cout,), fan_in),
             bn_init(cout), k, s))

    dec_cfg = [(1024, 512, 1, 2), (512, 256, 3, 2), (256, 128, 3, 2),
               (128, 64, 3, 2), (64, NC, 4, 2)]
    params["dec"] = []
    for idx, (cin, cout, k, s) in enumerate(dec_cfg):
        fan_in = cout * k * k
        bn = None if idx == len(dec_cfg) - 1 else bn_init(cout)
        params["dec"].append(
            (uinit((cin, cout, k, k), fan_in), uinit((cout,), fan_in), bn, k, s))

    def linear(din, dout):
        return uinit((din, dout), din), uinit((dout,), din)

    params["fc1"] = linear(1024, 512)
    params["fc21"] = linear(512, Z_DIM)
    params["fc22"] = linear(512, Z_DIM)
    params["fc3"] = linear(Z_DIM, 512)
    params["fc4"] = linear(512, 1024)
    return params


# ----------------------------------------------------------------------------
# Forward pass:  (recon, mu, logvar) = VAE_CNN(x)
# ----------------------------------------------------------------------------
def vae_cnn_forward(params, x_nchw, eps):
    # Convert once to NHWC at the model boundary; stay NHWC internally.
    h = x_nchw.transpose(0, 2, 3, 1)

    # ---- encode ----
    for w, b, bn, k, s in params["enc"]:
        h = conv2d_bn_act(h, w, b, bn, k, s, act="leaky_relu")
    B = h.shape[0]
    conv_flat = h.reshape(B, -1)                     # Flatten -> [B, 1024] (1x1 spatial)

    # ---- fc1 / fc21 / fc22 / reparameterize / fc3 / fc4 (single kernel) ----
    mu, logvar, deconv_in = bottleneck(params, conv_flat, eps)

    # ---- decode ----
    d = deconv_in.reshape(B, 1, 1, 1024)             # UnFlatten (NHWC, 1x1 spatial)
    n_dec = len(params["dec"])
    for i, (w, b, bn, k, s) in enumerate(params["dec"]):
        act = "sigmoid" if i == n_dec - 1 else "leaky_relu"
        d = conv_transpose2d_bn_act(d, w, b, bn, k, s, act=act)

    recon = d.transpose(0, 3, 1, 2)                  # back to NCHW
    return recon, mu, logvar


# ----------------------------------------------------------------------------
if __name__ == "__main__":
    key = jax.random.PRNGKey(0)
    kp, kx, ke = jax.random.split(key, 3)

    params = make_params(kp)

    B = 2
    # layout: NCHW, 32x32 CIFAR-like images (required so the encoder bottleneck
    # flattens to exactly 1024 features).
    x = jax.random.uniform(kx, (B, NC, 32, 32), jnp.float32)
    # eps replaces torch.randn_like(std) with a fixed deterministic draw.
    eps = jax.random.normal(ke, (B, Z_DIM), jnp.float32)

    recon, mu, logvar = vae_cnn_forward(params, x, eps)
    jax.block_until_ready((recon, mu, logvar))

    assert recon.shape == (B, NC, 32, 32), recon.shape
    assert mu.shape == (B, Z_DIM) and logvar.shape == (B, Z_DIM)
    assert bool(jnp.all((recon >= 0.0) & (recon <= 1.0)))   # sigmoid output
    print("KERNEL_OK")
</pallas_src>

<mosaic_0001>
module attributes {stable_mosaic.version = 11 : i64} {
  func.func @_fused_matmul_kernel(%arg0: i32, %arg1: memref<256x48xbf16, #tpu.memory_space<vmem>>, %arg2: memref<48x128xbf16, #tpu.memory_space<vmem>>, %arg3: memref<1x128xf32, #tpu.memory_space<vmem>>, %arg4: memref<1x128xf32, #tpu.memory_space<vmem>>, %arg5: memref<256x128xf32, #tpu.memory_space<vmem>>) attributes {dimension_semantics = [#tpu.dimension_semantics<parallel>], iteration_bounds = array<i64: 2>, scalar_prefetch = 0 : i64, scratch_operands = 0 : i64, tpu.core_type = #tpu.core_type<tc>, window_params = [{transform_indices = @transform_0, window_bounds = array<i64: 256, 48>}, {pipeline_mode = #tpu.pipeline_mode<synchronous>, transform_indices = @transform_1, window_bounds = array<i64: 48, 128>}, {pipeline_mode = #tpu.pipeline_mode<synchronous>, transform_indices = @transform_2, window_bounds = array<i64: 1, 128>}, {pipeline_mode = #tpu.pipeline_mode<synchronous>, transform_indices = @transform_3, window_bounds = array<i64: 1, 128>}, {transform_indices = @transform_4, window_bounds = array<i64: 256, 128>}]} {
    %c0 = arith.constant 0 : index
    %c0_0 = arith.constant 0 : index
    %0 = vector.load %arg1[%c0, %c0_0] : memref<256x48xbf16, #tpu.memory_space<vmem>>, vector<256x48xbf16>
    %c0_1 = arith.constant 0 : index
    %c0_2 = arith.constant 0 : index
    %1 = vector.load %arg2[%c0_1, %c0_2] : memref<48x128xbf16, #tpu.memory_space<vmem>>, vector<48x128xbf16>
    %cst = arith.constant dense<0.000000e+00> : vector<256x128xf32>
    %2 = tpu.matmul %0, %1, %cst {dimension_numbers = #tpu.dot_dimension_numbers<[1], [0], [0], [1], [0, 0, 1, 1], [], []>} : vector<256x48xbf16>, vector<48x128xbf16>, vector<256x128xf32> -> vector<256x128xf32>
    %c0_3 = arith.constant 0 : index
    %c0_4 = arith.constant 0 : index
    %3 = vector.load %arg3[%c0_3, %c0_4] : memref<1x128xf32, #tpu.memory_space<vmem>>, vector<1x128xf32>
    %4 = vector.broadcast %3 : vector<1x128xf32> to vector<256x128xf32>
    %5 = arith.mulf %2, %4 : vector<256x128xf32>
    %c0_5 = arith.constant 0 : index
    %c0_6 = arith.constant 0 : index
    %6 = vector.load %arg4[%c0_5, %c0_6] : memref<1x128xf32, #tpu.memory_space<vmem>>, vector<1x128xf32>
    %7 = vector.broadcast %6 : vector<1x128xf32> to vector<256x128xf32>
    %8 = arith.addf %5, %7 : vector<256x128xf32>
    %cst_7 = arith.constant 0.000000e+00 : f32
    %9 = vector.broadcast %cst_7 : f32 to vector<256x128xf32>
    %10 = arith.cmpf ogt, %8, %9 : vector<256x128xf32>
    %cst_8 = arith.constant 2.000000e-01 : f32
    %11 = vector.broadcast %cst_8 : f32 to vector<256x128xf32>
    %12 = arith.mulf %11, %8 : vector<256x128xf32>
    %13 = arith.select %10, %8, %12 : vector<256x128xi1>, vector<256x128xf32>
    %c0_9 = arith.constant 0 : index
    %c0_10 = arith.constant 0 : index
    %14 = vector.load %arg5[%c0_9, %c0_10] : memref<256x128xf32, #tpu.memory_space<vmem>>, vector<256x128xf32>
    tpu.vector_store %arg5[%c0_9, %c0_10], %13 {strides = array<i32>} : memref<256x128xf32, #tpu.memory_space<vmem>>, vector<256x128xf32>,
    return
  }
  func.func @transform_0(%arg0: i32) -> (i32, i32) {
    %c0_i32 = arith.constant 0 : i32
    %c0_i32_0 = arith.constant 0 : i32
    return %arg0, %c0_i32 : i32, i32
  }
  func.func @transform_1(%arg0: i32) -> (i32, i32) {
    %c0_i32 = arith.constant 0 : i32
    %c0_i32_0 = arith.constant 0 : i32
    %c0_i32_1 = arith.constant 0 : i32
    return %c0_i32, %c0_i32_0 : i32, i32
  }
  func.func @transform_2(%arg0: i32) -> (i32, i32) {
    %c0_i32 = arith.constant 0 : i32
    %c0_i32_0 = arith.constant 0 : i32
    %c0_i32_1 = arith.constant 0 : i32
    return %c0_i32, %c0_i32_0 : i32, i32
  }
  func.func @transform_3(%arg0: i32) -> (i32, i32) {
    %c0_i32 = arith.constant 0 : i32
    %c0_i32_0 = arith.constant 0 : i32
    %c0_i32_1 = arith.constant 0 : i32
    return %c0_i32, %c0_i32_0 : i32, i32
  }
  func.func @transform_4(%arg0: i32) -> (i32, i32) {
    %c0_i32 = arith.constant 0 : i32
    %c0_i32_0 = arith.constant 0 : i32
    return %arg0, %c0_i32 : i32, i32
  }
}

</mosaic_0001>

<bundles_post_ra>
// kernel: tpu_custom_call.1
= control target key start
LH: loop header
LB: loop body
LE: loop exit
PB: predicated region body
PF: predicated region fallthrough
CT: control target
= control target key end

     0   :  { %9 = vsyncpa [#allocation3], 0  ;;  %s1259_s0 = inlined_call_operand.vmem [shape: bf16[512,48], index: 0, kind: input, shape index: {}]   ;;  %s1260_s1 = inlined_call_operand.vmem [shape: bf16[48,128], index: 1, kind: input, shape index: {}]   ;;  %s1261_s2 = inlined_call_operand.vmem [shape: f32[1,128], index: 2, kind: input, shape index: {}]   ;;  %s1262_s3 = inlined_call_operand.vmem [shape: f32[1,128], index: 3, kind: input, shape index: {}]   ;;  %s1263_s4 = inlined_call_operand.hbm [shape: f32[512,128], index: 4, kind: output, shape index: {}]  }
   0x1   :  { %11 = vsyncpa [#allocation3 + $0x1], 0  ;;  %s1019_s15 = smov 0   ;;  %s1021_s16 = smov 0  }
   0x2   :  { %s1023_s17 = smov 0   ;;  %s1025_s18 = smov 0  }
   0x3 LB: > { %s1040_s19 = sadd.s32 4294967295, %s990_s18   ;;  %s752_s20 = sadd.s32 4294967294, %s990_s18   ;;  %s990_s18 = sphi %s1025_s18, %s1269_s18   ;;  %s986_s17 = sphi %s1023_s17, %s1268_s17   ;;  %s982_s16 = sphi %s1021_s16, %s1267_s16   ;;  %s978_s15 = sphi %s1019_s15, %s1266_s15  }
   0x4   : > { %s1044_s21 = sadd.s32 1, %s990_s18   ;;  %s113_s22 = sadd.s32 1, %s986_s17 }
   0x5   : > { %s110_s23 = ssub.s32 %s990_s18, %s1044_s21  ;;  %p123_p0 = scmp.ne.s32.totalorder %s986_s17, %s982_s16 }
   0x6   : > { %p111_p1 = scmp.eq.s32.totalorder %s110_s23, 0  ;;  %p124_p2 = scmp.eq.s32.totalorder %s1040_s19, 1 }
   0x7   : > { %p129_p3 = scmp.ne.s32.totalorder %s982_s16, %s978_s15  ;;  %p130_p4 = scmp.eq.s32.totalorder %s752_s20, 1 }
   0x8   : > { %s1055_s24 = scalar_select %p111_p1, %s986_s17, %s113_s22  }
   0x9   : > { %p1057_p5 = por %p124_p2, %p123_p0  ;;  %p1061_p6 = por %p130_p4, %p129_p3 }
   0xa   : > { %p755_p7 = scmp.ge.s32.totalorder %s990_s18, 1  ;;  %p166_p8 = scmp.lt.s32.totalorder %s990_s18, 3 }
   0xc   : > { %p167_p9 = pnand %p755_p7, %p166_p8 }
   0xd   : > { %s757_s29 = sshll.u32 (!%p167_p9), %s1040_s19, 5  ;;  %s189_s14 = sand.u32 (!%p167_p9), 1, %s982_s16  }
   0xe   : > { %170 = sbr.rel (%p167_p9) target bundleno = 232 (0xe8), region = 36  ;;  %p193_p10 = scmp.lt.s32.totalorder (!%p167_p9), %s757_s29, 63 }
   0xf   : > { %s756_s23 = sshll.u32 (!%p167_p9), %s189_s14, 8  ;;  %s875_s28 = sshll.u32 (!%p167_p9), %s1040_s19, 8 }
  0x10   : > { %s1131_s27 = scalar_lea.vmem (!%p167_p9), [#allocation2], %s756_s23  ;;  %s686_s30 = scalar_lea.hbm (!%p167_p9), %s1263_s4, %s875_s28 }
  0x11   : > { %s687_s5 = sshll.u32 (!%p167_p9), %s1131_s27, 4  ;;  %s675_s7 = scalar_lea.sflag (!%p167_p9), [#allocation3], %s189_s14  ;;  %s688_s5 = int_to_ptr.vmem [resolvable:$true] %s687_s5 }
  0x12   : > { %s948_s12 = scalar_lea.hbm (!%p167_p9), %s1263_s4, 512 }
  0x13   : > { %v874_v0 = vld [vmem:[%s1260_s1 + $0x10] sm:$0xff]  ;;  %v873_v1 = vld [vmem:[%s1260_s1 + $0x8] sm:$0xff]  ;;  %s1271_s29 = smov (!%p193_p10, %s757_s29), 63  ;;  %v872_v2 = vld [vmem:[%s1260_s1] sm:$0xff]  ;;  %vm336_vm0 = vcmask 392192  }
  0x14   : > { %390 = vmatpush.bf16.msra.mxu0 %v874_v0  ;;  %876 = vmatpush.bf16.msra.mxu1 %v874_v0  ;;  %s758_s6 = sshll.u32 %s1271_s29, 2  ;;  %v1117_v19 = vld [vmem:[%s1261_s2] ss:$0 sm:$0xff] }
  0x15   : > { %877 = vmatpush.bf16.msra.mxu2 %v874_v0  ;;  %878 = vmatpush.bf16.msra.mxu3 %v874_v0  ;;  %s1080_s11 = scalar_lea.vmem %s1259_s0, %s758_s6  ;;  %v1123_v20 = vld [vmem:[%s1262_s3] ss:$0 sm:$0xff]  ;;  %s689_s6 = sshll.u32 %s686_s30, 4  ;;  %s690_s6 = int_to_ptr.hbm [resolvable:$true] %s689_s6 }
  0x16   : > { %v856_v3 = vld [vmem:[%s1080_s11] sm:$0xff]  ;;  %v857_v7 = vld [vmem:[%s1080_s11 + $0x8] sm:$0xff]  ;;  %v858_v11 = vld [vmem:[%s1080_s11 + $0x10] sm:$0xff]  ;;  %s942_s8 = sshra.s32 %s690_s6, 4  ;;  %s943_s8 = int_to_ptr.hbm [resolvable:$true] %s942_s8 }
  0x17   : > { %v860_v4 = vld [vmem:[%s1080_s11 + $0x20] sm:$0xff]  ;;  %v861_v8 = vld [vmem:[%s1080_s11 + $0x28] sm:$0xff]  ;;  %v862_v12 = vld [vmem:[%s1080_s11 + $0x30] sm:$0xff]  ;;  %s944_s9 = scalar_lea.hbm %s943_s8, 256  ;;  %p949_p0 = scmp.lt.s32.totalorder %s943_s8, %s1263_s4 }
  0x18   : > { %391 = vmatpush.bf16.msra.mxu0 %v873_v1  ;;  %879 = vmatpush.bf16.msra.mxu1 %v873_v1  ;;  %v864_v5 = vld [vmem:[%s1080_s11 + $0x40] sm:$0xff]  ;;  %v865_v9 = vld [vmem:[%s1080_s11 + $0x48] sm:$0xff]  ;;  %v866_v13 = vld [vmem:[%s1080_s11 + $0x50] sm:$0xff]  ;;  %p945_p11 = scmp.ne.s32.totalorder %s943_s8, %s944_s9  ;;  %p950_p1 = scmp.lt.s32.totalorder %s948_s12, %s944_s9 }
  0x19   : > { %880 = vmatpush.bf16.msra.mxu2 %v873_v1  ;;  %881 = vmatpush.bf16.msra.mxu3 %v873_v1  ;;  %v868_v6 = vld [vmem:[%s1080_s11 + $0x60] sm:$0xff]  ;;  %v869_v10 = vld [vmem:[%s1080_s11 + $0x68] sm:$0xff]  ;;  %v870_v14 = vld [vmem:[%s1080_s11 + $0x70] sm:$0xff] }
  0x1a   : > { %v859_v15 = vld [vmem:[%s1080_s11 + $0x18] sm:$0xff]  ;;  %p946_p12 = pnand %p945_p11, %p1057_p5  ;;  %p951_p2 = por %p950_p1, %p949_p0 }
  0x1b   : > { %v863_v16 = vld [vmem:[%s1080_s11 + $0x38] sm:$0xff] }
  0x1c   : > { %392 = vmatpush.bf16.msra.mxu0 %v872_v2  ;;  %882 = vmatpush.bf16.msra.mxu1 %v872_v2  ;;  %v867_v17 = vld [vmem:[%s1080_s11 + $0x58] sm:$0xff]  ;;  %p947_p13 = pneg %p946_p12 }
  0x1d   : > { %883 = vmatpush.bf16.msra.mxu2 %v872_v2  ;;  %884 = vmatpush.bf16.msra.mxu3 %v872_v2  ;;  %v871_v18 = vld [vmem:[%s1080_s11 + $0x78] sm:$0xff] }
  0x1e   : > { %p952_p3 = pnand %p951_p2, %p947_p13 }
  0x1f   : > { %835 = vmatmul.msk.bf16.vlgmr.msra.gmra.mxu0 %vm336_vm0, %v856_v3  ;;  %839 = vmatmul.msk.bf16.vlgmr.msra.gmra.mxu1 %vm336_vm0, %v860_v4 }
  0x20   : > { %843 = vmatmul.msk.bf16.vlgmr.msra.gmra.mxu2 %vm336_vm0, %v864_v5  ;;  %847 = vmatmul.msk.bf16.vlgmr.msra.gmra.mxu3 %vm336_vm0, %v868_v6 }
  0x2f   : > { %836 = vmatmul.msk.bf16.gmra.mxu0 %vm336_vm0, %v857_v7  ;;  %840 = vmatmul.msk.bf16.gmra.mxu1 %vm336_vm0, %v861_v8 }
  0x30   : > { %844 = vmatmul.msk.bf16.gmra.mxu2 %vm336_vm0, %v865_v9  ;;  %848 = vmatmul.msk.bf16.gmra.mxu3 %vm336_vm0, %v869_v10 }
  0x3f   : > { %837 = vmatmul.msk.bf16.gmra.mxu0 %vm336_vm0, %v858_v11  ;;  %841 = vmatmul.msk.bf16.gmra.mxu1 %vm336_vm0, %v862_v12 }
  0x40   : > { %845 = vmatmul.msk.bf16.gmra.mxu2 %vm336_vm0, %v866_v13  ;;  %849 = vmatmul.msk.bf16.gmra.mxu3 %vm336_vm0, %v870_v14 }
  0x4f   : > { %838 = vmatmul.msk.bf16.gmra.mxu0 %vm336_vm0, %v859_v15  ;;  %842 = vmatmul.msk.bf16.gmra.mxu1 %vm336_vm0, %v863_v16 }
  0x50   : > { %846 = vmatmul.msk.bf16.gmra.mxu2 %vm336_vm0, %v867_v17  ;;  %850 = vmatmul.msk.bf16.gmra.mxu3 %vm336_vm0, %v871_v18 }
  0x9c   : > { %v394_v21 = vpop.f32.mrf.mxu0  ;;  %v414_v22 = vpop.f32.mrf.mxu1 }
  0x9d   : > { %v478_v23 = vmul.f32 %v1117_v19, %v394_v21  ;;  %v486_v24 = vmul.f32 %v1117_v19, %v414_v22 }
  0x9f   : > { %v514_v25 = vadd.f32 %v1123_v20, %v478_v23  ;;  %v522_v26 = vadd.f32 %v1123_v20, %v486_v24 }
  0xa1   : > { %vm546_vm1 = vcmp.gt.f32.partialorder %v514_v25, 0.0  ;;  %v578_v27 = vmul.f32 0.2, %v514_v25  ;;  %vm554_vm2 = vcmp.gt.f32.partialorder %v522_v26, 0.0  ;;  %v586_v28 = vmul.f32 0.2, %v522_v26 }
  0xa3   : > { %v610_v29 = vsel %vm546_vm1, %v514_v25, %v578_v27  ;;  %v618_v30 = vsel %vm554_vm2, %v522_v26, %v586_v28  ;;  %v434_v31 = vpop.f32.mrf.mxu2  ;;  %v454_v32 = vpop.f32.mrf.mxu3 }
  0xa4   : > { %642 = vst [vmem:[%s1131_s27] sm:$0xff] %v610_v29  ;;  %v494_v33 = vmul.f32 %v1117_v19, %v434_v31  ;;  %v502_v34 = vmul.f32 %v1117_v19, %v454_v32  ;;  %v396_v35 = vpop.f32.mrf.mxu0  ;;  %v416_v36 = vpop.f32.mrf.mxu1 }
  0xa5   : > { %650 = vst [vmem:[%s1131_s27 + $0x40] sm:$0xff] %v618_v30  ;;  %v479_v37 = vmul.f32 %v1117_v19, %v396_v35  ;;  %v487_v38 = vmul.f32 %v1117_v19, %v416_v36 }
  0xa6   : > { %v530_v39 = vadd.f32 %v1123_v20, %v494_v33  ;;  %v538_v40 = vadd.f32 %v1123_v20, %v502_v34 }
  0xa7   : > { %v515_v41 = vadd.f32 %v1123_v20, %v479_v37  ;;  %v523_v42 = vadd.f32 %v1123_v20, %v487_v38 }
  0xa8   : > { %vm562_vm3 = vcmp.gt.f32.partialorder %v530_v39, 0.0  ;;  %v594_v43 = vmul.f32 0.2, %v530_v39  ;;  %vm570_vm4 = vcmp.gt.f32.partialorder %v538_v40, 0.0  ;;  %v602_v44 = vmul.f32 0.2, %v538_v40 }
  0xa9   : > { %vm547_vm5 = vcmp.gt.f32.partialorder %v515_v41, 0.0  ;;  %v579_v45 = vmul.f32 0.2, %v515_v41  ;;  %vm555_vm6 = vcmp.gt.f32.partialorder %v523_v42, 0.0  ;;  %v587_v46 = vmul.f32 0.2, %v523_v42 }
  0xaa   : > { %v626_v47 = vsel %vm562_vm3, %v530_v39, %v594_v43  ;;  %v634_v48 = vsel %vm570_vm4, %v538_v40, %v602_v44 }
  0xab   : > { %658 = vst [vmem:[%s1131_s27 + $0x80] sm:$0xff] %v626_v47  ;;  %v611_v49 = vsel %vm547_vm5, %v515_v41, %v579_v45  ;;  %v619_v50 = vsel %vm555_vm6, %v523_v42, %v587_v46  ;;  %v436_v51 = vpop.f32.mrf.mxu2  ;;  %v456_v52 = vpop.f32.mrf.mxu3 }
  0xac   : > { %666 = vst [vmem:[%s1131_s27 + $0xc0] sm:$0xff] %v634_v48  ;;  %v495_v53 = vmul.f32 %v1117_v19, %v436_v51  ;;  %v503_v54 = vmul.f32 %v1117_v19, %v456_v52  ;;  %v399_v55 = vpop.f32.mrf.mxu0  ;;  %v419_v56 = vpop.f32.mrf.mxu1 }
  0xad   : > { %643 = vst [vmem:[%s1131_s27 + $0x8] sm:$0xff] %v611_v49  ;;  %v480_v57 = vmul.f32 %v1117_v19, %v399_v55  ;;  %v488_v58 = vmul.f32 %v1117_v19, %v419_v56 }
  0xae   : > { %651 = vst [vmem:[%s1131_s27 + $0x48] sm:$0xff] %v619_v50  ;;  %v531_v59 = vadd.f32 %v1123_v20, %v495_v53  ;;  %v539_v60 = vadd.f32 %v1123_v20, %v503_v54 }
  0xaf   : > { %v516_v61 = vadd.f32 %v1123_v20, %v480_v57  ;;  %v524_v62 = vadd.f32 %v1123_v20, %v488_v58 }
  0xb0   : > { %vm563_vm7 = vcmp.gt.f32.partialorder %v531_v59, 0.0  ;;  %v595_v63 = vmul.f32 0.2, %v531_v59  ;;  %vm571_vm8 = vcmp.gt.f32.partialorder %v539_v60, 0.0  ;;  %v603_v0 = vmul.f32 0.2, %v539_v60 }
  0xb1   : > { %vm548_vm9 = vcmp.gt.f32.partialorder %v516_v61, 0.0  ;;  %v580_v1 = vmul.f32 0.2, %v516_v61  ;;  %vm556_vm10 = vcmp.gt.f32.partialorder %v524_v62, 0.0  ;;  %v588_v2 = vmul.f32 0.2, %v524_v62 }
  0xb2   : > { %v627_v3 = vsel %vm563_vm7, %v531_v59, %v595_v63  ;;  %v635_v4 = vsel %vm571_vm8, %v539_v60, %v603_v0 }
  0xb3   : > { %659 = vst [vmem:[%s1131_s27 + $0x88] sm:$0xff] %v627_v3  ;;  %v612_v5 = vsel %vm548_vm9, %v516_v61, %v580_v1  ;;  %v620_v6 = vsel %vm556_vm10, %v524_v62, %v588_v2  ;;  %v439_v7 = vpop.f32.mrf.mxu2  ;;  %v459_v8 = vpop.f32.mrf.mxu3 }
  0xb4   : > { %667 = vst [vmem:[%s1131_s27 + $0xc8] sm:$0xff] %v635_v4  ;;  %v496_v9 = vmul.f32 %v1117_v19, %v439_v7  ;;  %v504_v10 = vmul.f32 %v1117_v19, %v459_v8  ;;  %v401_v11 = vpop.f32.mrf.mxu0  ;;  %v421_v12 = vpop.f32.mrf.mxu1 }
  0xb5   : > { %644 = vst [vmem:[%s1131_s27 + $0x10] sm:$0xff] %v612_v5  ;;  %v481_v13 = vmul.f32 %v1117_v19, %v401_v11  ;;  %v489_v14 = vmul.f32 %v1117_v19, %v421_v12 }
  0xb6   : > { %652 = vst [vmem:[%s1131_s27 + $0x50] sm:$0xff] %v620_v6  ;;  %v532_v15 = vadd.f32 %v1123_v20, %v496_v9  ;;  %v540_v16 = vadd.f32 %v1123_v20, %v504_v10 }
  0xb7   : > { %v517_v17 = vadd.f32 %v1123_v20, %v481_v13  ;;  %v525_v18 = vadd.f32 %v1123_v20, %v489_v14 }
  0xb8   : > { %vm564_vm11 = vcmp.gt.f32.partialorder %v532_v15, 0.0  ;;  %v596_v21 = vmul.f32 0.2, %v532_v15  ;;  %vm572_vm12 = vcmp.gt.f32.partialorder %v540_v16, 0.0  ;;  %v604_v22 = vmul.f32 0.2, %v540_v16 }
  0xb9   : > { %vm549_vm13 = vcmp.gt.f32.partialorder %v517_v17, 0.0  ;;  %v581_v23 = vmul.f32 0.2, %v517_v17  ;;  %vm557_vm14 = vcmp.gt.f32.partialorder %v525_v18, 0.0  ;;  %v589_v24 = vmul.f32 0.2, %v525_v18 }
  0xba   : > { %v628_v25 = vsel %vm564_vm11, %v532_v15, %v596_v21  ;;  %v636_v26 = vsel %vm572_vm12, %v540_v16, %v604_v22 }
  0xbb   : > { %660 = vst [vmem:[%s1131_s27 + $0x90] sm:$0xff] %v628_v25  ;;  %v613_v27 = vsel %vm549_vm13, %v517_v17, %v581_v23  ;;  %v621_v28 = vsel %vm557_vm14, %v525_v18, %v589_v24  ;;  %v441_v29 = vpop.f32.mrf.mxu2  ;;  %v461_v30 = vpop.f32.mrf.mxu3 }
  0xbc   : > { %668 = vst [vmem:[%s1131_s27 + $0xd0] sm:$0xff] %v636_v26  ;;  %v497_v31 = vmul.f32 %v1117_v19, %v441_v29  ;;  %v505_v32 = vmul.f32 %v1117_v19, %v461_v30  ;;  %v404_v33 = vpop.f32.mrf.mxu0  ;;  %v424_v34 = vpop.f32.mrf.mxu1 }
  0xbd   : > { %645 = vst [vmem:[%s1131_s27 + $0x18] sm:$0xff] %v613_v27  ;;  %v482_v35 = vmul.f32 %v1117_v19, %v404_v33  ;;  %v490_v36 = vmul.f32 %v1117_v19, %v424_v34 }
  0xbe   : > { %653 = vst [vmem:[%s1131_s27 + $0x58] sm:$0xff] %v621_v28  ;;  %v533_v37 = vadd.f32 %v1123_v20, %v497_v31  ;;  %v541_v38 = vadd.f32 %v1123_v20, %v505_v32 }
  0xbf   : > { %v518_v39 = vadd.f32 %v1123_v20, %v482_v35  ;;  %v526_v40 = vadd.f32 %v1123_v20, %v490_v36 }
  0xc0   : > { %vm565_vm15 = vcmp.gt.f32.partialorder %v533_v37, 0.0  ;;  %v597_v41 = vmul.f32 0.2, %v533_v37  ;;  %vm573_vm0 = vcmp.gt.f32.partialorder %v541_v38, 0.0  ;;  %v605_v42 = vmul.f32 0.2, %v541_v38 }
  0xc1   : > { %vm550_vm1 = vcmp.gt.f32.partialorder %v518_v39, 0.0  ;;  %v582_v43 = vmul.f32 0.2, %v518_v39  ;;  %vm558_vm2 = vcmp.gt.f32.partialorder %v526_v40, 0.0  ;;  %v590_v44 = vmul.f32 0.2, %v526_v40 }
  0xc2   : > { %v629_v45 = vsel %vm565_vm15, %v533_v37, %v597_v41  ;;  %v637_v46 = vsel %vm573_vm0, %v541_v38, %v605_v42 }
  0xc3   : > { %661 = vst [vmem:[%s1131_s27 + $0x98] sm:$0xff] %v629_v45  ;;  %v614_v47 = vsel %vm550_vm1, %v518_v39, %v582_v43  ;;  %v622_v48 = vsel %vm558_vm2, %v526_v40, %v590_v44  ;;  %v444_v49 = vpop.f32.mrf.mxu2  ;;  %v464_v50 = vpop.f32.mrf.mxu3 }
  0xc4   : > { %669 = vst [vmem:[%s1131_s27 + $0xd8] sm:$0xff] %v637_v46  ;;  %v498_v51 = vmul.f32 %v1117_v19, %v444_v49  ;;  %v506_v52 = vmul.f32 %v1117_v19, %v464_v50  ;;  %v406_v53 = vpop.f32.mrf.mxu0  ;;  %v426_v54 = vpop.f32.mrf.mxu1 }
  0xc5   : > { %646 = vst [vmem:[%s1131_s27 + $0x20] sm:$0xff] %v614_v47  ;;  %v483_v55 = vmul.f32 %v1117_v19, %v406_v53  ;;  %v491_v56 = vmul.f32 %v1117_v19, %v426_v54 }
  0xc6   : > { %654 = vst [vmem:[%s1131_s27 + $0x60] sm:$0xff] %v622_v48  ;;  %v534_v57 = vadd.f32 %v1123_v20, %v498_v51  ;;  %v542_v58 = vadd.f32 %v1123_v20, %v506_v52 }
  0xc7   : > { %v519_v59 = vadd.f32 %v1123_v20, %v483_v55  ;;  %v527_v60 = vadd.f32 %v1123_v20, %v491_v56 }
  0xc8   : > { %vm566_vm3 = vcmp.gt.f32.partialorder %v534_v57, 0.0  ;;  %v598_v61 = vmul.f32 0.2, %v534_v57  ;;  %vm574_vm4 = vcmp.gt.f32.partialorder %v542_v58, 0.0  ;;  %v606_v62 = vmul.f32 0.2, %v542_v58 }
  0xc9   : > { %vm551_vm5 = vcmp.gt.f32.partialorder %v519_v59, 0.0  ;;  %v583_v63 = vmul.f32 0.2, %v519_v59  ;;  %vm559_vm6 = vcmp.gt.f32.partialorder %v527_v60, 0.0  ;;  %v591_v0 = vmul.f32 0.2, %v527_v60 }
  0xca   : > { %v630_v1 = vsel %vm566_vm3, %v534_v57, %v598_v61  ;;  %v638_v2 = vsel %vm574_vm4, %v542_v58, %v606_v62 }
  0xcb   : > { %662 = vst [vmem:[%s1131_s27 + $0xa0] sm:$0xff] %v630_v1  ;;  %v615_v3 = vsel %vm551_vm5, %v519_v59, %v583_v63  ;;  %v623_v4 = vsel %vm559_vm6, %v527_v60, %v591_v0  ;;  %v446_v5 = vpop.f32.mrf.mxu2  ;;  %v466_v6 = vpop.f32.mrf.mxu3 }
  0xcc   : > { %670 = vst [vmem:[%s1131_s27 + $0xe0] sm:$0xff] %v638_v2  ;;  %v499_v7 = vmul.f32 %v1117_v19, %v446_v5  ;;  %v507_v8 = vmul.f32 %v1117_v19, %v466_v6  ;;  %v409_v9 = vpop.f32.mrf.mxu0  ;;  %v429_v10 = vpop.f32.mrf.mxu1 }
  0xcd   : > { %647 = vst [vmem:[%s1131_s27 + $0x28] sm:$0xff] %v615_v3  ;;  %v484_v11 = vmul.f32 %v1117_v19, %v409_v9  ;;  %v492_v12 = vmul.f32 %v1117_v19, %v429_v10 }
  0xce   : > { %655 = vst [vmem:[%s1131_s27 + $0x68] sm:$0xff] %v623_v4  ;;  %v535_v13 = vadd.f32 %v1123_v20, %v499_v7  ;;  %v543_v14 = vadd.f32 %v1123_v20, %v507_v8 }
  0xcf   : > { %v520_v15 = vadd.f32 %v1123_v20, %v484_v11  ;;  %v528_v16 = vadd.f32 %v1123_v20, %v492_v12 }
  0xd0   : > { %vm567_vm7 = vcmp.gt.f32.partialorder %v535_v13, 0.0  ;;  %v599_v17 = vmul.f32 0.2, %v535_v13  ;;  %vm575_vm8 = vcmp.gt.f32.partialorder %v543_v14, 0.0  ;;  %v607_v18 = vmul.f32 0.2, %v543_v14 }
  0xd1   : > { %vm552_vm9 = vcmp.gt.f32.partialorder %v520_v15, 0.0  ;;  %v584_v21 = vmul.f32 0.2, %v520_v15  ;;  %vm560_vm10 = vcmp.gt.f32.partialorder %v528_v16, 0.0  ;;  %v592_v22 = vmul.f32 0.2, %v528_v16 }
  0xd2   : > { %v631_v23 = vsel %vm567_vm7, %v535_v13, %v599_v17  ;;  %v639_v24 = vsel %vm575_vm8, %v543_v14, %v607_v18 }
  0xd3   : > { %663 = vst [vmem:[%s1131_s27 + $0xa8] sm:$0xff] %v631_v23  ;;  %v616_v25 = vsel %vm552_vm9, %v520_v15, %v584_v21  ;;  %v624_v26 = vsel %vm560_vm10, %v528_v16, %v592_v22  ;;  %v449_v27 = vpop.f32.mrf.mxu2  ;;  %v469_v28 = vpop.f32.mrf.mxu3 }
  0xd4   : > { %671 = vst [vmem:[%s1131_s27 + $0xe8] sm:$0xff] %v639_v24  ;;  %v500_v29 = vmul.f32 %v1117_v19, %v449_v27  ;;  %v508_v30 = vmul.f32 %v1117_v19, %v469_v28  ;;  %v411_v31 = vpop.f32.mrf.mxu0  ;;  %v431_v32 = vpop.f32.mrf.mxu1 }
  0xd5   : > { %648 = vst [vmem:[%s1131_s27 + $0x30] sm:$0xff] %v616_v25  ;;  %v485_v33 = vmul.f32 %v1117_v19, %v411_v31  ;;  %v493_v34 = vmul.f32 %v1117_v19, %v431_v32 }
  0xd6   : > { %656 = vst [vmem:[%s1131_s27 + $0x70] sm:$0xff] %v624_v26  ;;  %v536_v35 = vadd.f32 %v1123_v20, %v500_v29  ;;  %v544_v36 = vadd.f32 %v1123_v20, %v508_v30 }
  0xd7   : > { %v521_v37 = vadd.f32 %v1123_v20, %v485_v33  ;;  %v529_v38 = vadd.f32 %v1123_v20, %v493_v34 }
  0xd8   : > { %vm568_vm11 = vcmp.gt.f32.partialorder %v536_v35, 0.0  ;;  %v600_v39 = vmul.f32 0.2, %v536_v35  ;;  %vm576_vm12 = vcmp.gt.f32.partialorder %v544_v36, 0.0  ;;  %v608_v40 = vmul.f32 0.2, %v544_v36 }
  0xd9   : > { %vm553_vm13 = vcmp.gt.f32.partialorder %v521_v37, 0.0  ;;  %v585_v41 = vmul.f32 0.2, %v521_v37  ;;  %vm561_vm14 = vcmp.gt.f32.partialorder %v529_v38, 0.0  ;;  %v593_v42 = vmul.f32 0.2, %v529_v38 }
  0xda   : > { %v632_v43 = vsel %vm568_vm11, %v536_v35, %v600_v39  ;;  %v640_v44 = vsel %vm576_vm12, %v544_v36, %v608_v40 }
  0xdb   : > { %664 = vst [vmem:[%s1131_s27 + $0xb0] sm:$0xff] %v632_v43  ;;  %v617_v45 = vsel %vm553_vm13, %v521_v37, %v585_v41  ;;  %v625_v46 = vsel %vm561_vm14, %v529_v38, %v593_v42  ;;  %v451_v47 = vpop.f32.mrf.mxu2  ;;  %v471_v48 = vpop.f32.mrf.mxu3 }
  0xdc   : > { %672 = vst [vmem:[%s1131_s27 + $0xf0] sm:$0xff] %v640_v44  ;;  %v501_v49 = vmul.f32 %v1117_v19, %v451_v47  ;;  %v509_v50 = vmul.f32 %v1117_v19, %v471_v48 }
  0xdd   : > { %649 = vst [vmem:[%s1131_s27 + $0x38] sm:$0xff] %v617_v45 }
  0xde   : > { %657 = vst [vmem:[%s1131_s27 + $0x78] sm:$0xff] %v625_v46  ;;  %v537_v51 = vadd.f32 %v1123_v20, %v501_v49  ;;  %v545_v52 = vadd.f32 %v1123_v20, %v509_v50 }
  0xe0   : > { %vm569_vm15 = vcmp.gt.f32.partialorder %v537_v51, 0.0  ;;  %v601_v53 = vmul.f32 0.2, %v537_v51  ;;  %vm577_vm0 = vcmp.gt.f32.partialorder %v545_v52, 0.0  ;;  %v609_v54 = vmul.f32 0.2, %v545_v52 }
  0xe2   : > { %v633_v55 = vsel %vm569_vm15, %v537_v51, %v601_v53  ;;  %v641_v56 = vsel %vm577_vm0, %v545_v52, %v609_v54 }
  0xe3   : > { %665 = vst [vmem:[%s1131_s27 + $0xb8] sm:$0xff] %v633_v55 }
  0xe4   : > { %673 = vst [vmem:[%s1131_s27 + $0xf8] sm:$0xff] %v641_v56 }
  0xe5   : > { %955 = shalt.err (!%p952_p3)
}
  0xe6   : > { %s992_s14 = smov 128   ;;  %s993_s22 = smov 8  }
  0xe7   : > { %885 = dma.vmem_to_hbm [thread:$0]  (%p1057_p5), %s688_s5, 4096, %s690_s6, %s675_s7, %s992_s14, %s992_s14, %s993_s22  }
  0xe8 PF: > { %p891_p4 = scmp.ge.s32.totalorder %s990_s18, 2  ;;  %s704_s23 = sand.u32 1, %s978_s15  }
  0xe9   : > { %s705_s27 = scalar_lea.sflag [#allocation3], %s704_s23 }
  0xea   : > { %p888_p7 = pnand %p891_p4, %p1061_p6 }
  0xec   : > { %p889_p8 = pneg %p888_p7 }
  0xee   : > { %973 = dma.done.wait (%p889_p8), %s705_s27, 4096  }
  0xef   : > { %975 = vsyncadd (%p889_p8), %s705_s27, 4294963200  ;;  %p14_p9 = scmp.ge.s32.totalorder %s1044_s21, 4   ;;  %s1266_s15 = smov %s982_s16 }
  0xf0   : > { %s1267_s16 = smov %s986_s17  ;;  %s1268_s17 = smov %s1055_s24 }
  0xf1   : > { %s1269_s18 = smov %s1044_s21  ;;  %16 = sbr.rel (!%p14_p9) target bundleno = 3 (0x3), region = 71 }
  0xf6   :  { %711 = vsyncpa [#allocation3], 1 }
  0xf7   :  { %713 = vsyncpa [#allocation3 + $0x1], 1 }

</bundles_post_ra>
